<compile_context>
chip_gen: v7x
topology: tpu7x:2x2x1
jax: 0.10.0
libtpu: 0.0.40
codegen_flags: <defaults>
</compile_context>

<pallas_src>
import functools
import math
import numbers
from collections.abc import Sequence

import numpy as np
import jax
import jax.numpy as jnp
from jax import lax
from jax.experimental import pallas as pl
from jax.experimental.pallas import tpu as pltpu


# ----------------------------------------------------------------------------
# Host-side helpers (mirror the PyTorch module's __init__ / get_params logic)
# ----------------------------------------------------------------------------
def _check_sequence_input(x, name, req_sizes):
    msg = req_sizes[0] if len(req_sizes) < 2 else ' or '.join(str(s) for s in req_sizes)
    if not isinstance(x, Sequence):
        raise TypeError('{} should be a sequence of length {}.'.format(name, msg))
    if len(x) not in req_sizes:
        raise ValueError('{} should be sequence of length {}.'.format(name, msg))


def _setup_angle(x, name, req_sizes=(2,)):
    if isinstance(x, numbers.Number):
        if x < 0:
            raise ValueError('If {} is a single number, it must be positive.'.format(name))
        x = [-x, x]
    else:
        _check_sequence_input(x, name, req_sizes)
    return [float(d) for d in x]


def _uniform(lo, hi):
    # torch.empty(1).uniform_(lo, hi); deterministic when lo == hi (the only
    # case exercised here).  TODO(synk): midpoint instead of true sampling.
    if lo == hi:
        return float(lo)
    return float(0.5 * (lo + hi))


def _get_inverse_affine_matrix(center, angle, translate, scale, shear):
    # Same math as torchvision.transforms.functional._get_inverse_affine_matrix
    rot = math.radians(angle)
    sx = math.radians(shear[0])
    sy = math.radians(shear[1])
    cx, cy = center
    tx, ty = translate

    a = math.cos(rot - sy) / math.cos(sy)
    b = -math.cos(rot - sy) * math.tan(sx) / math.cos(sy) - math.sin(rot)
    c = math.sin(rot - sy) / math.cos(sy)
    d = -math.sin(rot - sy) * math.tan(sx) / math.cos(sy) + math.cos(rot)

    matrix = [d, -b, 0.0, -c, a, 0.0]
    matrix = [m / scale for m in matrix]
    matrix[2] += matrix[0] * (-cx - tx) + matrix[1] * (-cy - ty)
    matrix[5] += matrix[3] * (-cx - tx) + matrix[4] * (-cy - ty)
    matrix[2] += cx
    matrix[5] += cy
    return matrix


def _round_up(x, m):
    return ((x + m - 1) // m) * m


def _largest_div_mult(total, cap, unit):
    """Largest multiple of `unit` that divides `total` and is <= cap (min: unit)."""
    best = unit
    t = unit
    limit = min(total, max(cap, unit))
    while t <= limit:
        if total % t == 0:
            best = t
        t += unit
    return best


def _vmem_capacity_bytes():
    try:
        return int(pltpu.get_tpu_info().vmem_capacity_bytes)
    except Exception:
        return 64 << 20  # conservative (v7x-sized) default


def _affine_source_indices(matrix, H, W, HWp):
    """Precompute, once, the flat source index and in-bounds mask per output pixel."""
    a, b, c, d, e, f = [float(m) for m in matrix]
    cx, cy = (W - 1) * 0.5, (H - 1) * 0.5
    HW = H * W
    o = np.arange(HWp, dtype=np.int64)
    jj = (o % W).astype(np.float64)
    ii = (o // W).astype(np.float64)
    xo, yo = jj - cx, ii - cy
    src_x = a * xo + b * yo + c + cx
    src_y = d * xo + e * yo + f + cy
    sx = np.rint(src_x).astype(np.int64)
    sy = np.rint(src_y).astype(np.int64)
    valid = o < HW
    inb = (sx >= 0) & (sx < W) & (sy >= 0) & (sy < H) & valid
    src = np.clip(sy, 0, H - 1) * W + np.clip(sx, 0, W - 1)
    src = np.where(valid, src, 0)
    return (jnp.asarray(src.reshape(1, HWp), jnp.int32),
            jnp.asarray(inb.astype(np.int32).reshape(1, HWp)))


# ----------------------------------------------------------------------------
# Kernels
# ----------------------------------------------------------------------------
def _affine_gather_kernel(src_ref, inb_ref, img_ref, fill_ref, out_ref):
    """Direct lane gather: out[r, o] = img[r, src[o]] (fill where out-of-bounds).

    src_ref : (1, HWp) int32    clipped flat source index per output pixel
    inb_ref : (1, HWp) int32    1 if the source is in-bounds, else 0
    img_ref : (TM, HWp)         flattened image rows for this tile
    fill_ref: (TM, 1)           per-(image, channel) fill value
    out_ref : (TM, HWp)
    """
    img = img_ref[...]
    idx = jnp.broadcast_to(src_ref[...], img.shape)
    g = jnp.take_along_axis(img, idx, axis=1,
                            mode=lax.GatherScatterMode.PROMISE_IN_BOUNDS)
    keep = jnp.broadcast_to(inb_ref[...] != 0, img.shape)
    fillv = jnp.broadcast_to(fill_ref[...], img.shape).astype(img.dtype)
    out_ref[...] = jnp.where(keep, g, fillv).astype(out_ref.dtype)


def _affine_matmul_kernel(src_ref, inb_ref, img_ref, fill_ref, out_ref):
    """Fallback: K-tiled one-hot gather-as-matmul on the MXU.

    Grid step (r, s, k):
      src_ref : (1, T_o) int32   flat source index of each output pixel
      inb_ref : (1, T_o) int32   in-bounds mask
      img_ref : (TM, TK)         source-pixel slice k of the flattened rows
      fill_ref: (TM, 1)
      out_ref : (TM, T_o)        resident across the k axis (accumulator)
    """
    k = pl.program_id(2)
    nk = pl.num_programs(2)
    tk = img_ref.shape[1]

    # One-hot slice for sources in [k*TK, (k+1)*TK): (TK, 1) sublane iota vs
    # (1, T_o) indices -- no full (TK, T_o) int32 temp is materialized.
    local = src_ref[...] - k * tk
    row = lax.broadcasted_iota(jnp.int32, (tk, 1), 0)
    sel = (row == local).astype(img_ref.dtype)

    partial = jnp.dot(img_ref[...], sel, preferred_element_type=jnp.float32)

    @pl.when(k == 0)
    def _():
        out_ref[...] = partial.astype(out_ref.dtype)

    @pl.when(k != 0)
    def _():
        # Exact even in bf16: every output pixel receives exactly one non-zero
        # contribution over all k slices.
        out_ref[...] = (out_ref[...].astype(jnp.float32) + partial).astype(out_ref.dtype)

    @pl.when(k == nk - 1)
    def _():
        keep = jnp.broadcast_to(inb_ref[...] != 0, out_ref.shape)
        fillv = jnp.broadcast_to(fill_ref[...], out_ref.shape).astype(out_ref.dtype)
        out_ref[...] = jnp.where(keep, out_ref[...], fillv)


# ----------------------------------------------------------------------------
# VMEM budgeting
# ----------------------------------------------------------------------------
def _gather_vmem_bytes(tm, hwp, isz):
    return int(2 * tm * hwp * isz          # img tile (double-buffered)
               + 2 * tm * hwp * isz        # out tile (double-buffered)
               + tm * hwp * 4              # broadcast int32 index
               + tm * hwp * (isz + 1)      # gathered values + keep mask
               + 4 * hwp * 4               # src / inb strips
               + 2 * tm * isz              # fill column
               + (2 << 20))                # misc headroom


def _matmul_vmem_bytes(tm, t_o, tk, isz):
    return int(2 * tm * tk * isz           # img slice (double-buffered)
               + 2 * tm * t_o * isz        # out strip (double-buffered)
               + tk * t_o * (isz + 4)      # one-hot slice + compare temporaries
               + tm * t_o * 4              # f32 matmul result
               + 4 * t_o * 4               # src / inb strips
               + 2 * tm * isz              # fill column
               + (2 << 20))                # misc headroom


# ----------------------------------------------------------------------------
# Gather fast path: build + probe (cached per signature), fall back on failure
# ----------------------------------------------------------------------------
def _build_gather_call(nc_pad, tm, hwp, dtype, vmem_limit):
    dtype = np.dtype(dtype)
    return jax.jit(pl.pallas_call(
        _affine_gather_kernel,
        out_shape=jax.ShapeDtypeStruct((nc_pad, hwp), dtype),
        grid_spec=pltpu.PrefetchScalarGridSpec(
            num_scalar_prefetch=0,
            grid=(nc_pad // tm,),
            in_specs=[
                pl.BlockSpec((1, hwp), lambda r: (0, 0)),
                pl.BlockSpec((1, hwp), lambda r: (0, 0)),
                pl.BlockSpec((tm, hwp), lambda r: (r, 0)),
                pl.BlockSpec((tm, 1), lambda r: (r, 0)),
            ],
            out_specs=pl.BlockSpec((tm, hwp), lambda r: (r, 0)),
        ),
        compiler_params=pltpu.CompilerParams(
            dimension_semantics=("parallel",),
            vmem_limit_bytes=int(vmem_limit),
        ),
        cost_estimate=pl.CostEstimate(
            flops=int(nc_pad * hwp),
            transcendentals=0,
            bytes_accessed=int(2 * nc_pad * hwp * dtype.itemsize + 2 * hwp * 4),
        ),
    ))


@functools.lru_cache(maxsize=None)
def _gather_fn_or_none(nc_pad, tm, hwp, dtype, vmem_limit):
    """Return a compiled gather-path callable, or None if Mosaic can't lower /
    produces wrong values (then the matmul fallback is used)."""
    try:
        fn = _build_gather_call(nc_pad, tm, hwp, dtype, vmem_limit)
        # Synthetic probe at the real shapes: values exact in bf16, distinct enough
        # to catch a silently-wrong (wrapping / garbage) gather lowering.
        row = np.arange(nc_pad, dtype=np.int64)[:, None]
        col = np.arange(hwp, dtype=np.int64)[None, :]
        img = jnp.asarray(((row * 7 + col * 3) % 239).astype(np.float32), np.dtype(dtype))
        idx = ((np.arange(hwp, dtype=np.int64) * 131 + 7) % hwp).astype(np.int32)
        src = jnp.asarray(idx[None, :])
        inb = jnp.ones((1, hwp), jnp.int32)
        fill = jnp.zeros((nc_pad, 1), np.dtype(dtype))
        got = jax.block_until_ready(fn(src, inb, img, fill))
        got32 = np.asarray(got.astype(jnp.float32))
        want = np.asarray(img.astype(jnp.float32))[:, idx]
        if not np.array_equal(got32, want):
            return None
        return fn
    except Exception:
        return None


# ----------------------------------------------------------------------------
# Wrapper
# ----------------------------------------------------------------------------
def affine_nearest_pallas(img, matrix, fill_per_channel, *,
                          use_gather=True, tm_cap=None, t_o_cap=None, tk_cap=None):
    """img: (N, C, H, W); matrix: 6 floats (inverse affine); fill: (C,) floats."""
    N, C, H, W = img.shape
    NC, HW = N * C, H * W
    orig_dtype = img.dtype

    if img.dtype in (np.dtype(np.float32), np.dtype(jnp.bfloat16)):
        compute_dtype = np.dtype(img.dtype)
    else:
        # TODO(synk): integer dtypes are round-tripped through f32 (exact copies).
        compute_dtype = np.dtype(np.float32)
    isz = compute_dtype.itemsize

    HWp = _round_up(HW, 128)
    NC8 = _round_up(NC, 8)

    img_flat = img.reshape(NC, HW).astype(compute_dtype)
    if NC8 != NC or HWp != HW:
        img_flat = jnp.pad(img_flat, ((0, NC8 - NC), (0, HWp - HW)))

    fill_col = jnp.tile(jnp.asarray(fill_per_channel, compute_dtype)[None, :],
                        (N, 1)).reshape(NC, 1)
    if NC8 != NC:
        fill_col = jnp.pad(fill_col, ((0, NC8 - NC), (0, 0)))

    src_flat, inb = _affine_source_indices(matrix, H, W, HWp)

    capacity = _vmem_capacity_bytes()
    budget = int(0.7 * capacity)          # stay well below physical VMEM (v7x: 64 MiB)
    if tm_cap is None:
        tm_cap = 256
    if t_o_cap is None:
        t_o_cap = 1024 if capacity >= (100 << 20) else 512
    if tk_cap is None:
        tk_cap = 4096 if capacity >= (100 << 20) else 2048

    def _finish(out_flat):
        out = out_flat[:NC, :HW].reshape(N, C, H, W)
        return out if out.dtype == orig_dtype else out.astype(orig_dtype)

    # ---------- fast path: direct lane gather (probe-validated) ----------
    if use_gather:
        TMg = _largest_div_mult(NC8, tm_cap, 8)
        while TMg > 8 and _gather_vmem_bytes(TMg, HWp, isz) > budget:
            TMg = _largest_div_mult(NC8, TMg - 8, 8)
        if _gather_vmem_bytes(TMg, HWp, isz) <= budget:
            vlim_g = int(min(budget, max(int(1.25 * _gather_vmem_bytes(TMg, HWp, isz)),
                                         16 << 20)))
            fn = _gather_fn_or_none(NC8, TMg, HWp, compute_dtype, vlim_g)
            if fn is not None:
                return _finish(fn(src_flat, inb, img_flat, fill_col))

    # ---------- fallback: K-tiled one-hot gather-as-matmul ----------
    TM = _largest_div_mult(NC8, tm_cap, 8)
    T_o = _largest_div_mult(HWp, t_o_cap, 128)
    TK = _largest_div_mult(HWp, tk_cap, 128)
    while _matmul_vmem_bytes(TM, T_o, TK, isz) > budget:
        if TK > 512:
            TK = _largest_div_mult(HWp, TK // 2, 128)
            continue
        if T_o > 256:
            T_o = _largest_div_mult(HWp, T_o // 2, 128)
            continue
        if TK > 128:
            TK = _largest_div_mult(HWp, TK // 2, 128)
            continue
        if TM > 8:
            TM = _largest_div_mult(NC8, TM // 2, 8)
            continue
        break

    grid = (NC8 // TM, HWp // T_o, HWp // TK)
    nk, ns = grid[2], grid[1]
    # Image row tile stays resident across strips only when there is a single
    # contraction slice (its block index is then constant along s and k).
    img_passes = 1 if nk == 1 else ns
    f32_mxu = compute_dtype == np.dtype(np.float32)
    cost = pl.CostEstimate(
        flops=int(2 * NC8 * HWp * HWp) * (3 if f32_mxu else 1),
        transcendentals=0,
        bytes_accessed=int(NC8 * HWp * isz * img_passes + NC8 * HWp * isz
                           + 2 * HWp * 4 + NC8 * isz),
    )
    needed = _matmul_vmem_bytes(TM, T_o, TK, isz)
    vlim = int(min(budget, max(int(1.25 * needed), 16 << 20)))

    out_flat = pl.pallas_call(
        _affine_matmul_kernel,
        out_shape=jax.ShapeDtypeStruct((NC8, HWp), compute_dtype),
        grid_spec=pltpu.PrefetchScalarGridSpec(
            num_scalar_prefetch=0,
            grid=grid,
            in_specs=[
                pl.BlockSpec((1, T_o), lambda r, s, k: (0, s)),   # src indices
                pl.BlockSpec((1, T_o), lambda r, s, k: (0, s)),   # in-bounds mask
                pl.BlockSpec((TM, TK), lambda r, s, k: (r, k)),   # image slice
                pl.BlockSpec((TM, 1), lambda r, s, k: (r, 0)),    # fill column
            ],
            out_specs=pl.BlockSpec((TM, T_o), lambda r, s, k: (r, s)),
        ),
        compiler_params=pltpu.CompilerParams(
            dimension_semantics=("parallel", "parallel", "arbitrary"),
            vmem_limit_bytes=vlim,
        ),
        cost_estimate=cost,
    )(src_flat, inb, img_flat, fill_col)

    return _finish(out_flat)


# ----------------------------------------------------------------------------
# The module
# ----------------------------------------------------------------------------
class MyRandomAffinePallas:
    def __init__(self, degrees, translate=None, inverse_translate=None, scale=None,
                 inv_scale=None, shear=None, fill=0):
        self.degrees = _setup_angle(degrees, name='degrees', req_sizes=(2,))
        if translate is not None:
            _check_sequence_input(translate, 'translate', req_sizes=(2,))
            for t in translate:
                if not 0.0 <= t <= 1.0:
                    raise ValueError('translation values should be between 0 and 1')
        self.translate = translate
        if inverse_translate is not None:
            _check_sequence_input(inverse_translate, 'inverse_translate', req_sizes=(2,))
        self.inverse_translate = inverse_translate
        if scale is not None:
            _check_sequence_input(scale, 'scale', req_sizes=(2,))
            for s in scale:
                if s <= 0:
                    raise ValueError('scale values should be positive')
        self.scale = scale
        self.inv_scale = inv_scale
        self.shear = _setup_angle(shear, name='shear', req_sizes=(2, 4)) if shear is not None else None
        if fill is None:
            fill = 0
        self.fill = fill

    @staticmethod
    def get_params(degrees, translate, inverse_translate, scale_ranges,
                   inv_scale_ranges, shears, img_size):
        angle = _uniform(degrees[0], degrees[1])
        if translate is not None:
            max_dx = float(translate[0] * img_size[0])
            max_dy = float(translate[1] * img_size[1])
            tx = int(round(_uniform(-max_dx, max_dx)))
            ty = int(round(_uniform(-max_dy, max_dy)))
            translations = (tx, ty)
        elif inverse_translate is not None:
            translations = tuple(inverse_translate)
        else:
            translations = (0, 0)
        if scale_ranges is not None:
            scale = _uniform(scale_ranges[0], scale_ranges[1])
        elif inv_scale_ranges is not None:
            scale = inv_scale_ranges
        else:
            scale = 1.0
        shear_x = shear_y = 0.0
        if shears is not None:
            shear_x = _uniform(shears[0], shears[1])
            if len(shears) == 4:
                shear_y = _uniform(shears[2], shears[3])
        return angle, translations, scale, (shear_x, shear_y)

    def forward(self, img):
        N, C, H, W = img.shape
        fill = self.fill
        if isinstance(fill, (int, float)):
            fill = [float(fill)] * C
        else:
            fill = [float(f) for f in fill]
        img_size = [W, H]
        angle, translations, scale, shear = self.get_params(
            self.degrees, self.translate, self.inverse_translate,
            self.scale, self.inv_scale, self.shear, img_size)
        matrix = _get_inverse_affine_matrix(
            [0.0, 0.0], angle, [1.0 * t for t in translations], float(scale), shear)
        out = affine_nearest_pallas(img, matrix, fill)
        return out, translations, scale

    __call__ = forward


# ----------------------------------------------------------------------------
# Pure-numpy reference (same math) for correctness checks
# ----------------------------------------------------------------------------
def _ref_affine_nearest(img, matrix, fill):
    img = np.asarray(img)
    N, C, H, W = img.shape
    a, b, c, d, e, f = matrix
    cx, cy = (W - 1) * 0.5, (H - 1) * 0.5
    jj, ii = np.meshgrid(np.arange(W, dtype=np.float64),
                         np.arange(H, dtype=np.float64))
    src_x = a * (jj - cx) + b * (ii - cy) + c + cx
    src_y = d * (jj - cx) + e * (ii - cy) + f + cy
    sx = np.rint(src_x).astype(np.int64)
    sy = np.rint(src_y).astype(np.int64)
    inb = (sx >= 0) & (sx < W) & (sy >= 0) & (sy < H)
    sxc = np.clip(sx, 0, W - 1)
    syc = np.clip(sy, 0, H - 1)
    out = np.empty_like(img)
    for n in range(N):
        for ch in range(C):
            out[n, ch] = np.where(inb, img[n, ch][syc, sxc], fill[ch])
    return out


if __name__ == "__main__":
    key = jax.random.PRNGKey(0)
    x = jax.random.normal(key, (2, 4, 16, 16), dtype=jnp.float32)

    # Degenerate ranges -> deterministic params, same code path as the module.
    module = MyRandomAffinePallas(
        degrees=(20.0, 20.0),
        translate=None,
        inverse_translate=(2, -3),
        scale=(0.9, 0.9),
        shear=(5.0, 5.0),
        fill=0,
    )

    out, translations, scale = module(x)
    out = jax.block_until_ready(out)

    # Reference of the exact same transform.
    angle, trans, sc, shear = module.get_params(
        module.degrees, module.translate, module.inverse_translate,
        module.scale, module.inv_scale, module.shear, [16, 16])
    matrix = _get_inverse_affine_matrix([0.0, 0.0], angle,
                                        [1.0 * t for t in trans], float(sc), shear)
    ref = _ref_affine_nearest(np.asarray(x), matrix, [0.0] * 4)
    np.testing.assert_allclose(np.asarray(out), ref, atol=1e-5, rtol=1e-5)

    # Force the matmul fallback path (single K slice) and check it too.
    out_mm = affine_nearest_pallas(x, matrix, [0.0] * 4, use_gather=False)
    out_mm = jax.block_until_ready(out_mm)
    np.testing.assert_allclose(np.asarray(out_mm), ref, atol=1e-5, rtol=1e-5)

    # Exercise the K-tiled accumulator + multi-strip grid on the fallback path.
    out_tiled = affine_nearest_pallas(x, matrix, [0.0] * 4, use_gather=False,
                                      tm_cap=8, t_o_cap=128, tk_cap=128)
    out_tiled = jax.block_until_ready(out_tiled)
    np.testing.assert_allclose(np.asarray(out_tiled), ref, atol=1e-5, rtol=1e-5)

    # bf16 input: native-dtype DMA + bf16 MXU / bf16 gather path (exact copies).
    xb = x.astype(jnp.bfloat16)
    out_b = affine_nearest_pallas(xb, matrix, [0.0] * 4)
    out_b = jax.block_until_ready(out_b)
    ref_b = _ref_affine_nearest(np.asarray(xb.astype(jnp.float32)), matrix, [0.0] * 4)
    np.testing.assert_allclose(np.asarray(out_b.astype(jnp.float32)), ref_b,
                               atol=1e-5, rtol=1e-5)

    assert translations == (2, -3)
    assert abs(scale - 0.9) < 1e-12
    assert out.dtype == x.dtype and out_b.dtype == xb.dtype
    print("KERNEL_OK")
</pallas_src>

<mosaic_0001>
module attributes {stable_mosaic.version = 11 : i64} {
  func.func @_affine_gather_kernel(%arg0: i32, %arg1: memref<1x256xi32, #tpu.memory_space<vmem>>, %arg2: memref<1x256xi32, #tpu.memory_space<vmem>>, %arg3: memref<8x256xf32, #tpu.memory_space<vmem>>, %arg4: memref<8x1xf32, #tpu.memory_space<vmem>>, %arg5: memref<8x256xf32, #tpu.memory_space<vmem>>) attributes {dimension_semantics = [#tpu.dimension_semantics<parallel>], iteration_bounds = array<i64: 1>, scalar_prefetch = 0 : i64, scratch_operands = 0 : i64, tpu.core_type = #tpu.core_type<tc>, window_params = [{pipeline_mode = #tpu.pipeline_mode<synchronous>, transform_indices = @transform_0, window_bounds = array<i64: 1, 256>}, {pipeline_mode = #tpu.pipeline_mode<synchronous>, transform_indices = @transform_1, window_bounds = array<i64: 1, 256>}, {transform_indices = @transform_2, window_bounds = array<i64: 8, 256>}, {transform_indices = @transform_3, window_bounds = array<i64: 8, 1>}, {transform_indices = @transform_4, window_bounds = array<i64: 8, 256>}]} {
    %c0 = arith.constant 0 : index
    %c0_0 = arith.constant 0 : index
    %0 = vector.load %arg3[%c0, %c0_0] : memref<8x256xf32, #tpu.memory_space<vmem>>, vector<8x256xf32>
    %c0_1 = arith.constant 0 : index
    %c0_2 = arith.constant 0 : index
    %1 = vector.load %arg1[%c0_1, %c0_2] : memref<1x256xi32, #tpu.memory_space<vmem>>, vector<1x256xi32>
    %2 = vector.shape_cast %1 : vector<1x256xi32> to vector<1x256xi32>
    %3 = vector.broadcast %2 : vector<1x256xi32> to vector<8x256xi32>
    %c0_i32 = arith.constant 0 : i32
    %4 = vector.broadcast %c0_i32 : i32 to vector<8x256xi32>
    %5 = arith.cmpi slt, %3, %4 : vector<8x256xi32>
    %c256_i32 = arith.constant 256 : i32
    %6 = vector.broadcast %c256_i32 : i32 to vector<8x256xi32>
    %7 = arith.addi %3, %6 : vector<8x256xi32>
    %8 = arith.select %5, %7, %3 : vector<8x256xi1>, vector<8x256xi32>
    %9 = vector.shape_cast %8 : vector<8x256xi32> to vector<8x256x1xi32>
    %10 = vector.shape_cast %9 : vector<8x256x1xi32> to vector<8x256xi32>
    %11 = tpu.dynamic_gather %0[%10] in [1] : vector<8x256xf32>, vector<8x256xi32> -> vector<8x256xf32>
    %c0_3 = arith.constant 0 : index
    %c0_4 = arith.constant 0 : index
    %12 = vector.load %arg2[%c0_3, %c0_4] : memref<1x256xi32, #tpu.memory_space<vmem>>, vector<1x256xi32>
    %c0_i32_5 = arith.constant 0 : i32
    %13 = vector.broadcast %c0_i32_5 : i32 to vector<1x256xi32>
    %14 = arith.cmpi ne, %12, %13 : vector<1x256xi32>
    %15 = vector.shape_cast %14 : vector<1x256xi1> to vector<1x256xi1>
    %16 = vector.broadcast %15 : vector<1x256xi1> to vector<8x256xi1>
    %c0_6 = arith.constant 0 : index
    %c0_7 = arith.constant 0 : index
    %17 = vector.load %arg4[%c0_6, %c0_7] : memref<8x1xf32, #tpu.memory_space<vmem>>, vector<8x1xf32>
    %18 = vector.shape_cast %17 : vector<8x1xf32> to vector<8x1xf32>
    %19 = vector.broadcast %18 : vector<8x1xf32> to vector<8x256xf32>
    %20 = arith.select %16, %11, %19 : vector<8x256xi1>, vector<8x256xf32>
    %c0_8 = arith.constant 0 : index
    %c0_9 = arith.constant 0 : index
    %21 = vector.load %arg5[%c0_8, %c0_9] : memref<8x256xf32, #tpu.memory_space<vmem>>, vector<8x256xf32>
    tpu.vector_store %arg5[%c0_8, %c0_9], %20 {strides = array<i32>} : memref<8x256xf32, #tpu.memory_space<vmem>>, vector<8x256xf32>,
    return
  }
  func.func @transform_0(%arg0: i32) -> (i32, i32) {
    %c0_i32 = arith.constant 0 : i32
    %c0_i32_0 = arith.constant 0 : i32
    %c0_i32_1 = arith.constant 0 : i32
    return %c0_i32, %c0_i32_0 : i32, i32
  }
  func.func @transform_1(%arg0: i32) -> (i32, i32) {
    %c0_i32 = arith.constant 0 : i32
    %c0_i32_0 = arith.constant 0 : i32
    %c0_i32_1 = arith.constant 0 : i32
    return %c0_i32, %c0_i32_0 : i32, i32
  }
  func.func @transform_2(%arg0: i32) -> (i32, i32) {
    %c0_i32 = arith.constant 0 : i32
    %c0_i32_0 = arith.constant 0 : i32
    return %arg0, %c0_i32 : i32, i32
  }
  func.func @transform_3(%arg0: i32) -> (i32, i32) {
    %c0_i32 = arith.constant 0 : i32
    %c0_i32_0 = arith.constant 0 : i32
    return %arg0, %c0_i32 : i32, i32
  }
  func.func @transform_4(%arg0: i32) -> (i32, i32) {
    %c0_i32 = arith.constant 0 : i32
    %c0_i32_0 = arith.constant 0 : i32
    return %arg0, %c0_i32 : i32, i32
  }
}

module attributes {stable_mosaic.version = 11 : i64} {
  func.func @_affine_matmul_kernel(%arg0: i32, %arg1: i32, %arg2: i32, %arg3: memref<1x256xi32, #tpu.memory_space<vmem>>, %arg4: memref<1x256xi32, #tpu.memory_space<vmem>>, %arg5: memref<8x256xf32, #tpu.memory_space<vmem>>, %arg6: memref<8x1xf32, #tpu.memory_space<vmem>>, %arg7: memref<8x256xf32, #tpu.memory_space<vmem>>) attributes {dimension_semantics = [#tpu.dimension_semantics<parallel>, #tpu.dimension_semantics<parallel>, #tpu.dimension_semantics<arbitrary>], iteration_bounds = array<i64: 1, 1, 1>, scalar_prefetch = 0 : i64, scratch_operands = 0 : i64, tpu.core_type = #tpu.core_type<tc>, window_params = [{transform_indices = @transform_0, window_bounds = array<i64: 1, 256>}, {transform_indices = @transform_1, window_bounds = array<i64: 1, 256>}, {transform_indices = @transform_2, window_bounds = array<i64: 8, 256>}, {transform_indices = @transform_3, window_bounds = array<i64: 8, 1>}, {transform_indices = @transform_4, window_bounds = array<i64: 8, 256>}]} {
    %c0 = arith.constant 0 : index
    %c0_0 = arith.constant 0 : index
    %0 = vector.load %arg3[%c0, %c0_0] : memref<1x256xi32, #tpu.memory_space<vmem>>, vector<1x256xi32>
    %c256_i32 = arith.constant 256 : i32
    %1 = arith.muli %arg2, %c256_i32 : i32
    %2 = vector.broadcast %1 : i32 to vector<1x256xi32>
    %3 = arith.subi %0, %2 : vector<1x256xi32>
    %4 = tpu.iota {dimensions = array<i32: 0>} : vector<256x1xi32>
    %5 = vector.broadcast %4 : vector<256x1xi32> to vector<256x256xi32>
    %6 = vector.broadcast %3 : vector<1x256xi32> to vector<256x256xi32>
    %7 = arith.cmpi eq, %5, %6 : vector<256x256xi32>
    %8 = arith.extui %7 : vector<256x256xi1> to vector<256x256xi32>
    %9 = arith.sitofp %8 : vector<256x256xi32> to vector<256x256xf32>
    %c0_1 = arith.constant 0 : index
    %c0_2 = arith.constant 0 : index
    %10 = vector.load %arg5[%c0_1, %c0_2] : memref<8x256xf32, #tpu.memory_space<vmem>>, vector<8x256xf32>
    %cst = arith.constant dense<0.000000e+00> : vector<8x256xf32>
    %11 = tpu.matmul %10, %9, %cst {dimension_numbers = #tpu.dot_dimension_numbers<[1], [0], [0], [1], [0, 0, 1, 1], [], []>} : vector<8x256xf32>, vector<256x256xf32>, vector<8x256xf32> -> vector<8x256xf32>
    %c0_i32 = arith.constant 0 : i32
    %12 = arith.cmpi eq, %arg2, %c0_i32 : i32
    %13 = arith.extui %12 : i1 to i32
    %c0_i32_3 = arith.constant 0 : i32
    %14 = arith.cmpi ne, %13, %c0_i32_3 : i32
    scf.if %14 {
      %c0_8 = arith.constant 0 : index
      %c0_9 = arith.constant 0 : index
      %21 = vector.load %arg7[%c0_8, %c0_9] : memref<8x256xf32, #tpu.memory_space<vmem>>, vector<8x256xf32>
      tpu.vector_store %arg7[%c0_8, %c0_9], %11 {strides = array<i32>} : memref<8x256xf32, #tpu.memory_space<vmem>>, vector<8x256xf32>,
    } else {
    }
    %c0_i32_4 = arith.constant 0 : i32
    %15 = arith.cmpi ne, %arg2, %c0_i32_4 : i32
    %16 = arith.extui %15 : i1 to i32
    %c0_i32_5 = arith.constant 0 : i32
    %17 = arith.cmpi ne, %16, %c0_i32_5 : i32
    scf.if %17 {
      %c0_8 = arith.constant 0 : index
      %c0_9 = arith.constant 0 : index
      %21 = vector.load %arg7[%c0_8, %c0_9] : memref<8x256xf32, #tpu.memory_space<vmem>>, vector<8x256xf32>
      %22 = arith.addf %21, %11 : vector<8x256xf32>
      %c0_10 = arith.constant 0 : index
      %c0_11 = arith.constant 0 : index
      %23 = vector.load %arg7[%c0_10, %c0_11] : memref<8x256xf32, #tpu.memory_space<vmem>>, vector<8x256xf32>
      tpu.vector_store %arg7[%c0_10, %c0_11], %22 {strides = array<i32>} : memref<8x256xf32, #tpu.memory_space<vmem>>, vector<8x256xf32>,
    } else {
    }
    %c0_i32_6 = arith.constant 0 : i32
    %18 = arith.cmpi eq, %arg2, %c0_i32_6 : i32
    %19 = arith.extui %18 : i1 to i32
    %c0_i32_7 = arith.constant 0 : i32
    %20 = arith.cmpi ne, %19, %c0_i32_7 : i32
    scf.if %20 {
      %c0_8 = arith.constant 0 : index
      %c0_9 = arith.constant 0 : index
      %21 = vector.load %arg4[%c0_8, %c0_9] : memref<1x256xi32, #tpu.memory_space<vmem>>, vector<1x256xi32>
      %c0_i32_10 = arith.constant 0 : i32
      %22 = vector.broadcast %c0_i32_10 : i32 to vector<1x256xi32>
      %23 = arith.cmpi ne, %21, %22 : vector<1x256xi32>
      %24 = vector.shape_cast %23 : vector<1x256xi1> to vector<1x256xi1>
      %25 = vector.broadcast %24 : vector<1x256xi1> to vector<8x256xi1>
      %c0_11 = arith.constant 0 : index
      %c0_12 = arith.constant 0 : index
      %26 = vector.load %arg6[%c0_11, %c0_12] : memref<8x1xf32, #tpu.memory_space<vmem>>, vector<8x1xf32>
      %27 = vector.shape_cast %26 : vector<8x1xf32> to vector<8x1xf32>
      %28 = vector.broadcast %27 : vector<8x1xf32> to vector<8x256xf32>
      %c0_13 = arith.constant 0 : index
      %c0_14 = arith.constant 0 : index
      %29 = vector.load %arg7[%c0_13, %c0_14] : memref<8x256xf32, #tpu.memory_space<vmem>>, vector<8x256xf32>
      %30 = arith.select %25, %29, %28 : vector<8x256xi1>, vector<8x256xf32>
      %c0_15 = arith.constant 0 : index
      %c0_16 = arith.constant 0 : index
      %31 = vector.load %arg7[%c0_15, %c0_16] : memref<8x256xf32, #tpu.memory_space<vmem>>, vector<8x256xf32>
      tpu.vector_store %arg7[%c0_15, %c0_16], %30 {strides = array<i32>} : memref<8x256xf32, #tpu.memory_space<vmem>>, vector<8x256xf32>,
    } else {
    }
    return
  }
  func.func @transform_0(%arg0: i32, %arg1: i32, %arg2: i32) -> (i32, i32) {
    %c0_i32 = arith.constant 0 : i32
    %c0_i32_0 = arith.constant 0 : i32
    return %c0_i32, %arg1 : i32, i32
  }
  func.func @transform_1(%arg0: i32, %arg1: i32, %arg2: i32) -> (i32, i32) {
    %c0_i32 = arith.constant 0 : i32
    %c0_i32_0 = arith.constant 0 : i32
    return %c0_i32, %arg1 : i32, i32
  }
  func.func @transform_2(%arg0: i32, %arg1: i32, %arg2: i32) -> (i32, i32) {
    %c0_i32 = arith.constant 0 : i32
    return %arg0, %arg2 : i32, i32
  }
  func.func @transform_3(%arg0: i32, %arg1: i32, %arg2: i32) -> (i32, i32) {
    %c0_i32 = arith.constant 0 : i32
    %c0_i32_0 = arith.constant 0 : i32
    return %arg0, %c0_i32 : i32, i32
  }
  func.func @transform_4(%arg0: i32, %arg1: i32, %arg2: i32) -> (i32, i32) {
    %c0_i32 = arith.constant 0 : i32
    return %arg0, %arg1 : i32, i32
  }
}

</mosaic_0001>

<bundles_post_ra>
// kernel: tpu_custom_call.1
= control target key start
LH: loop header
LB: loop body
LE: loop exit
PB: predicated region body
PF: predicated region fallthrough
CT: control target
= control target key end

     0   :  { %9 = vsyncpa [#allocation3], 0  ;;  %s910_s0 = inlined_call_operand.hbm [shape: s32[1,256], index: 0, kind: input, shape index: {}]   ;;  %s911_s1 = inlined_call_operand.hbm [shape: s32[1,256], index: 1, kind: input, shape index: {}]   ;;  %s912_s2 = inlined_call_operand.vmem [shape: f32[8,256], index: 2, kind: input, shape index: {}]   ;;  %s913_s3 = inlined_call_operand.vmem [shape: f32[8,1], index: 3, kind: input, shape index: {}]   ;;  %s914_s4 = inlined_call_operand.hbm [shape: f32[8,256], index: 4, kind: output, shape index: {}]  }
   0x1   :  { %10 = vsyncpa [#allocation6], 0 }
   0x2   :  { %11 = vsyncpa [#allocation4], 0  ;;  %s682_s15 = smov [#allocation2]   ;;  %s683_s17 = smov [#allocation5]  }
   0x3   :  { %s18_s16 = sshll.u32 %s682_s15, 4  ;;  %s28_s18 = sshll.u32 %s683_s17, 4  ;;  %s19_s16 = int_to_ptr.vmem [resolvable:$true] %s18_s16  ;;  %s29_s18 = int_to_ptr.vmem [resolvable:$true] %s28_s18 }
   0x4   :  { %s610_s21 = scalar_lea.hbm %s910_s0, 32 }
   0x5   :  { %p611_p0 = scmp.ne.s32.totalorder %s910_s0, %s610_s21  ;;  %p614_p1 = scmp.lt.u32.totalorder %s610_s21, %s910_s0 }
   0x7   :  { %p616_p2 = pnand %p614_p1, %p611_p0 }
   0x9   :  { %619 = shalt.err (!%p616_p2)
}
   0xa   :  { %s620_s26 = scalar_lea.vmem %s19_s16, 32  ;;  %p625_p4 = scmp.lt.s32.totalorder %s19_s16, %s19_s16 }
   0xb   :  { %p621_p3 = scmp.ne.s32.totalorder %s19_s16, %s620_s26  ;;  %p626_p5 = scmp.lt.s32.totalorder %s620_s26, %s620_s26 }
   0xd   :  { %p627_p6 = por %p626_p5, %p625_p4 }
   0xf   :  { %p628_p7 = pnand %p627_p6, %p621_p3 }
  0x11   :  { %631 = shalt.err (!%p628_p7)
}
  0x12   :  { %21 = dma.hbm_to_vmem [thread:$0]  %s910_s0, 32, %s19_s16, [#allocation3]  }
  0x13   :  { %s632_s5 = scalar_lea.hbm %s911_s1, 32 }
  0x14   :  { %p633_p8 = scmp.ne.s32.totalorder %s911_s1, %s632_s5  ;;  %p636_p9 = scmp.lt.u32.totalorder %s632_s5, %s911_s1 }
  0x16   :  { %p638_p10 = pnand %p636_p9, %p633_p8 }
  0x18   :  { %641 = shalt.err (!%p638_p10)
}
  0x19   :  { %s642_s10 = scalar_lea.vmem %s29_s18, 32  ;;  %p647_p12 = scmp.lt.s32.totalorder %s29_s18, %s29_s18 }
  0x1a   :  { %p643_p11 = scmp.ne.s32.totalorder %s29_s18, %s642_s10  ;;  %p648_p13 = scmp.lt.s32.totalorder %s642_s10, %s642_s10 }
  0x1c   :  { %p649_p0 = por %p648_p13, %p647_p12 }
  0x1e   :  { %p650_p1 = pnand %p649_p0, %p643_p11 }
  0x20   :  { %653 = shalt.err (!%p650_p1)
}
  0x21   :  { %31 = dma.hbm_to_vmem [thread:$0]  %s911_s1, 32, %s29_s18, [#allocation6]  }
  0x22   :  { %676 = dma.done.wait [#allocation3], 32  }
  0x23   :  { %677 = vsyncadd [#allocation3], 4294967264 }
  0x24   :  { %678 = dma.done.wait [#allocation6], 32  }
  0x25   :  { %679 = vsyncadd [#allocation6], 4294967264  ;;  %v46_v0 = vlaneseq  ;;  %v684_v1 = vmov 0   ;;  %v42_v6 = vld [vmem:[#allocation2] sm:$0x3]  ;;  %v280_v13 = vld [vmem:[%s912_s2 + $0x8] sm:$0xff] }
  0x26   :  { %609 = vset.pattern.permute.xlu0 %v684_v1  ;;  %345 = vmatprep.mubr.f32.mxu0 %v280_v13  ;;  %v384_v14 = vld [vmem:[%s913_s3] sm:$0xff]  ;;  %v685_v15 = vmov 1.0|1.0   ;;  %s686_s16 = smov [#allocation7]  }
  0x27   :  { %v737_v2 = vshrl.u32 %v46_v0, 7  ;;  %387 = vperm.xlu0 %609, %v384_v14   ;;  %v371_v22 = vld [vmem:[#allocation5] sm:$0x3]  ;;  %s402_s17 = sshll.u32 %s686_s16, 4  ;;  %s403_s17 = int_to_ptr.vmem [resolvable:$true] %s402_s17 }
  0x28   :  { %v279_v46 = vld [vmem:[%s912_s2] sm:$0xff]  ;;  %s654_s18 = scalar_lea.vmem %s403_s17, 256  ;;  %p659_p3 = scmp.lt.s32.totalorder %s403_s17, %s403_s17 }
  0x29   :  { %v81_v3 = vsub.s32 0, %v737_v2  ;;  %v85_v4 = vsub.s32 1, %v737_v2  ;;  %v48_v5 = vadd.s32 8, %v737_v2  ;;  %v49_v7 = vadd.s32 16, %v737_v2  ;;  %p655_p2 = scmp.ne.s32.totalorder %s403_s17, %s654_s18  ;;  %p660_p4 = scmp.lt.s32.totalorder %s654_s18, %s654_s18 }
  0x2a   :  { %v50_v8 = vadd.s32 24, %v737_v2  ;;  %v51_v11 = vadd.s32 32, %v737_v2  ;;  %v52_v12 = vadd.s32 40, %v737_v2  ;;  %v53_v16 = vadd.s32 48, %v737_v2 }
  0x2b   :  { %v746_v9 = vrot.slane %v42_v6, %v81_v3  ;;  %v750_v10 = vrot.slane %v42_v6, %v85_v4  ;;  %v54_v17 = vadd.s32 56, %v737_v2  ;;  %v55_v18 = vadd.s32 64, %v737_v2  ;;  %p661_p5 = por %p660_p4, %p659_p3 }
  0x2c   :  { %v56_v19 = vadd.s32 72, %v737_v2  ;;  %v57_v20 = vadd.s32 80, %v737_v2  ;;  %v58_v21 = vadd.s32 88, %v737_v2  ;;  %v59_v23 = vadd.s32 96, %v737_v2 }
  0x2d   :  { %vm88_vm0 = vcmp.eq.s32.totalorder %v737_v2, %v750_v10  ;;  %vm90_vm1 = vcmp.eq.s32.totalorder %v48_v5, %v750_v10  ;;  %vm87_vm2 = vcmp.eq.s32.totalorder %v737_v2, %v746_v9  ;;  %vm89_vm3 = vcmp.eq.s32.totalorder %v48_v5, %v746_v9  ;;  %p662_p6 = pnand %p661_p5, %p655_p2 }
  0x2e   :  { %vm540_vm4 = vmpackc.low %vm90_vm1, %vm88_vm0  ;;  %vm92_vm5 = vcmp.eq.s32.totalorder %v49_v7, %v750_v10  ;;  %vm94_vm6 = vcmp.eq.s32.totalorder %v50_v8, %v750_v10  ;;  %vm91_vm7 = vcmp.eq.s32.totalorder %v49_v7, %v746_v9  ;;  %vm93_vm8 = vcmp.eq.s32.totalorder %v50_v8, %v746_v9 }
  0x2f   :  { %541 = vmatprep.subr.msk.bf16.mxu0 %vm540_vm4, %v685_v15  ;;  %vm542_vm9 = vmpackc.low %vm89_vm3, %vm87_vm2  ;;  %vm96_vm10 = vcmp.eq.s32.totalorder %v51_v11, %v750_v10  ;;  %vm98_vm11 = vcmp.eq.s32.totalorder %v52_v12, %v750_v10  ;;  %vm95_vm15 = vcmp.eq.s32.totalorder %v51_v11, %v746_v9  ;;  %vm97_vm0 = vcmp.eq.s32.totalorder %v52_v12, %v746_v9 }
  0x30   :  { %543 = vmatpush1.bf16.msk.msra.mxu0 %vm542_vm9, %v685_v15  ;;  %vm544_vm12 = vmpackc.low %vm94_vm6, %vm92_vm5  ;;  %vm100_vm1 = vcmp.eq.s32.totalorder %v53_v16, %v750_v10  ;;  %vm102_vm2 = vcmp.eq.s32.totalorder %v54_v17, %v750_v10  ;;  %vm99_vm5 = vcmp.eq.s32.totalorder %v53_v16, %v746_v9  ;;  %vm101_vm6 = vcmp.eq.s32.totalorder %v54_v17, %v746_v9 }
  0x31   :  { %545 = vmatprep.subr.msk.bf16.mxu0 %vm544_vm12, %v685_v15  ;;  %vm546_vm13 = vmpackc.low %vm93_vm8, %vm91_vm7  ;;  %vm104_vm7 = vcmp.eq.s32.totalorder %v55_v18, %v750_v10  ;;  %vm106_vm8 = vcmp.eq.s32.totalorder %v56_v19, %v750_v10  ;;  %vm105_vm12 = vcmp.eq.s32.totalorder %v56_v19, %v746_v9  ;;  %v60_v24 = vadd.s32 104, %v737_v2 }
  0x32   :  { %vm548_vm14 = vmpackc.low %vm98_vm11, %vm96_vm10  ;;  %vm103_vm11 = vcmp.eq.s32.totalorder %v55_v18, %v746_v9  ;;  %v61_v25 = vadd.s32 112, %v737_v2  ;;  %v62_v26 = vadd.s32 120, %v737_v2  ;;  %v63_v30 = vadd.s32 128, %v737_v2 }
  0x33   :  { %vm550_vm3 = vmpackc.low %vm97_vm0, %vm95_vm15  ;;  %vm372_vm0 = vcmp.ne.s32.totalorder %v371_v22, 0  ;;  %v64_v31 = vadd.s32 136, %v737_v2  ;;  %v65_v32 = vadd.s32 144, %v737_v2  ;;  %v66_v33 = vadd.s32 152, %v737_v2 }
  0x34   :  { %547 = vmatpush1.bf16.msk.msra.mxu0 %vm546_vm13, %v685_v15  ;;  %vm552_vm4 = vmpackc.low %vm102_vm2, %vm100_vm1  ;;  %vm108_vm13 = vcmp.eq.s32.totalorder %v57_v20, %v750_v10  ;;  %vm107_vm2 = vcmp.eq.s32.totalorder %v57_v20, %v746_v9  ;;  %v373_v27 = vsel %vm372_vm0, 1, %v684_v1  ;;  %vm120_vm0 = vcmp.eq.s32.totalorder %v63_v30, %v750_v10 }
  0x35   :  { %549 = vmatprep.subr.msk.bf16.mxu0 %vm548_vm14, %v685_v15  ;;  %vm554_vm9 = vmpackc.low %vm101_vm6, %vm99_vm5  ;;  %vm110_vm14 = vcmp.eq.s32.totalorder %v58_v21, %v750_v10  ;;  %vm114_vm5 = vcmp.eq.s32.totalorder %v60_v24, %v750_v10  ;;  %v812_v28 = vrot.slane %v373_v27, %v81_v3  ;;  %v816_v29 = vrot.slane %v373_v27, %v85_v4 }
  0x36   :  { %vm556_vm10 = vmpackc.low %vm106_vm8, %vm104_vm7  ;;  %vm111_vm8 = vcmp.eq.s32.totalorder %v59_v23, %v746_v9  ;;  %v67_v34 = vadd.s32 160, %v737_v2  ;;  %v68_v35 = vadd.s32 168, %v737_v2  ;;  %v69_v36 = vadd.s32 176, %v737_v2 }
  0x37   :  { %vm558_vm15 = vmpackc.low %vm105_vm12, %vm103_vm11  ;;  %vm118_vm11 = vcmp.eq.s32.totalorder %v62_v26, %v750_v10  ;;  %v70_v37 = vadd.s32 184, %v737_v2  ;;  %v71_v38 = vadd.s32 192, %v737_v2  ;;  %v72_v39 = vadd.s32 200, %v737_v2 }
  0x38   :  { %551 = vmatpush1.bf16.msk.msra.mxu0 %vm550_vm3, %v685_v15  ;;  %vm560_vm1 = vmpackc.low %vm110_vm14, %vm108_vm13  ;;  %vm109_vm3 = vcmp.eq.s32.totalorder %v58_v21, %v746_v9  ;;  %vm115_vm14 = vcmp.eq.s32.totalorder %v61_v25, %v746_v9  ;;  %v73_v40 = vadd.s32 208, %v737_v2  ;;  %v74_v41 = vadd.s32 216, %v737_v2 }
  0x39   :  { %553 = vmatprep.subr.msk.bf16.mxu0 %vm552_vm4, %v685_v15  ;;  %vm112_vm4 = vcmp.eq.s32.totalorder %v59_v23, %v750_v10  ;;  %vm562_vm6 = vmpackc.low %vm109_vm3, %vm107_vm2  ;;  %v75_v42 = vadd.s32 224, %v737_v2  ;;  %v76_v43 = vadd.s32 232, %v737_v2  ;;  %v77_v44 = vadd.s32 240, %v737_v2 }
  0x3a   :  { %vm564_vm7 = vmpackc.low %vm114_vm5, %vm112_vm4  ;;  %vm119_vm4 = vcmp.eq.s32.totalorder %v63_v30, %v746_v9  ;;  %vm121_vm5 = vcmp.eq.s32.totalorder %v64_v31, %v746_v9  ;;  %v78_v45 = vadd.s32 248, %v737_v2 }
  0x3c   :  { %555 = vmatpush1.bf16.msk.msra.mxu0 %vm554_vm9, %v685_v15  ;;  %vm113_vm9 = vcmp.eq.s32.totalorder %v60_v24, %v746_v9 }
  0x3d   :  { %557 = vmatprep.subr.msk.bf16.mxu0 %vm556_vm10, %v685_v15  ;;  %vm116_vm10 = vcmp.eq.s32.totalorder %v61_v25, %v750_v10  ;;  %vm566_vm12 = vmpackc.low %vm113_vm9, %vm111_vm8 }
  0x3e   :  { %vm568_vm13 = vmpackc.low %vm118_vm11, %vm116_vm10  ;;  %vm123_vm10 = vcmp.eq.s32.totalorder %v65_v32, %v746_v9  ;;  %vm125_vm11 = vcmp.eq.s32.totalorder %v66_v33, %v746_v9 }
  0x3f   :  { %vm574_vm8 = vmpackc.low %vm121_vm5, %vm119_vm4 }
  0x40   :  { %559 = vmatpush1.bf16.msk.msra.mxu0 %vm558_vm15, %v685_v15  ;;  %vm117_vm15 = vcmp.eq.s32.totalorder %v62_v26, %v746_v9 }
  0x41   :  { %561 = vmatprep.subr.msk.bf16.mxu0 %vm560_vm1, %v685_v15  ;;  %vm122_vm1 = vcmp.eq.s32.totalorder %v64_v31, %v750_v10  ;;  %vm570_vm2 = vmpackc.low %vm117_vm15, %vm115_vm14 }
  0x42   :  { %vm572_vm3 = vmpackc.low %vm122_vm1, %vm120_vm0  ;;  %vm127_vm0 = vcmp.eq.s32.totalorder %v67_v34, %v746_v9  ;;  %vm129_vm1 = vcmp.eq.s32.totalorder %v68_v35, %v746_v9 }
  0x43   :  { %vm578_vm14 = vmpackc.low %vm125_vm11, %vm123_vm10 }
  0x44   :  { %563 = vmatpush1.bf16.msk.msra.mxu0 %vm562_vm6, %v685_v15  ;;  %vm124_vm6 = vcmp.eq.s32.totalorder %v65_v32, %v750_v10  ;;  %vm582_vm4 = vmpackc.low %vm129_vm1, %vm127_vm0 }
  0x45   :  { %565 = vmatprep.subr.msk.bf16.mxu0 %vm564_vm7, %v685_v15  ;;  %vm126_vm7 = vcmp.eq.s32.totalorder %v66_v33, %v750_v10 }
  0x46   :  { %vm576_vm9 = vmpackc.low %vm126_vm7, %vm124_vm6  ;;  %vm131_vm6 = vcmp.eq.s32.totalorder %v69_v36, %v746_v9  ;;  %vm133_vm7 = vcmp.eq.s32.totalorder %v70_v37, %v746_v9 }
  0x47   :  { %vm586_vm10 = vmpackc.low %vm133_vm7, %vm131_vm6 }
  0x48   :  { %567 = vmatpush1.bf16.msk.msra.mxu0 %vm566_vm12, %v685_v15  ;;  %vm128_vm12 = vcmp.eq.s32.totalorder %v67_v34, %v750_v10 }
  0x49   :  { %569 = vmatprep.subr.msk.bf16.mxu0 %vm568_vm13, %v685_v15  ;;  %vm130_vm13 = vcmp.eq.s32.totalorder %v68_v35, %v750_v10 }
  0x4a   :  { %vm580_vm15 = vmpackc.low %vm130_vm13, %vm128_vm12  ;;  %vm135_vm12 = vcmp.eq.s32.totalorder %v71_v38, %v746_v9  ;;  %vm137_vm13 = vcmp.eq.s32.totalorder %v72_v39, %v746_v9 }
  0x4b   :  { %vm590_vm0 = vmpackc.low %vm137_vm13, %vm135_vm12 }
  0x4c   :  { %571 = vmatpush1.bf16.msk.msra.mxu0 %vm570_vm2, %v685_v15  ;;  %vm132_vm2 = vcmp.eq.s32.totalorder %v69_v36, %v750_v10 }
  0x4d   :  { %573 = vmatprep.subr.msk.bf16.mxu0 %vm572_vm3, %v685_v15  ;;  %vm134_vm3 = vcmp.eq.s32.totalorder %v70_v37, %v750_v10 }
  0x4e   :  { %vm584_vm5 = vmpackc.low %vm134_vm3, %vm132_vm2  ;;  %vm139_vm2 = vcmp.eq.s32.totalorder %v73_v40, %v746_v9  ;;  %vm141_vm3 = vcmp.eq.s32.totalorder %v74_v41, %v746_v9 }
  0x4f   :  { %vm594_vm6 = vmpackc.low %vm141_vm3, %vm139_vm2  ;;  %vm383_vm2 = vcmp.eq.s32.totalorder %v816_v29, 1 }
  0x50   :  { %575 = vmatpush1.bf16.msk.msra.mxu0 %vm574_vm8, %v685_v15  ;;  %vm136_vm8 = vcmp.eq.s32.totalorder %v71_v38, %v750_v10 }
  0x51   :  { %577 = vmatprep.subr.msk.bf16.mxu0 %vm576_vm9, %v685_v15  ;;  %vm138_vm9 = vcmp.eq.s32.totalorder %v72_v39, %v750_v10 }
  0x52   :  { %vm588_vm11 = vmpackc.low %vm138_vm9, %vm136_vm8  ;;  %vm143_vm8 = vcmp.eq.s32.totalorder %v75_v42, %v746_v9  ;;  %vm145_vm9 = vcmp.eq.s32.totalorder %v76_v43, %v746_v9 }
  0x53   :  { %vm598_vm12 = vmpackc.low %vm145_vm9, %vm143_vm8 }
  0x54   :  { %579 = vmatpush1.bf16.msk.msra.mxu0 %vm578_vm14, %v685_v15  ;;  %vm140_vm14 = vcmp.eq.s32.totalorder %v73_v40, %v750_v10 }
  0x55   :  { %581 = vmatprep.subr.msk.bf16.mxu0 %vm580_vm15, %v685_v15  ;;  %vm142_vm15 = vcmp.eq.s32.totalorder %v74_v41, %v750_v10 }
  0x56   :  { %vm592_vm1 = vmpackc.low %vm142_vm15, %vm140_vm14  ;;  %vm147_vm14 = vcmp.eq.s32.totalorder %v77_v44, %v746_v9  ;;  %vm149_vm15 = vcmp.eq.s32.totalorder %v78_v45, %v746_v9 }
  0x58   :  { %583 = vmatpush1.bf16.msk.msra.mxu0 %vm582_vm4, %v685_v15  ;;  %vm144_vm4 = vcmp.eq.s32.totalorder %v75_v42, %v750_v10 }
  0x59   :  { %585 = vmatprep.subr.msk.bf16.mxu0 %vm584_vm5, %v685_v15  ;;  %vm146_vm5 = vcmp.eq.s32.totalorder %v76_v43, %v750_v10 }
  0x5a   :  { %vm596_vm7 = vmpackc.low %vm146_vm5, %vm144_vm4 }
  0x5c   :  { %587 = vmatpush1.bf16.msk.msra.mxu0 %vm586_vm10, %v685_v15  ;;  %vm148_vm10 = vcmp.eq.s32.totalorder %v77_v44, %v750_v10 }
  0x5d   :  { %589 = vmatprep.subr.msk.bf16.mxu0 %vm588_vm11, %v685_v15  ;;  %vm150_vm11 = vcmp.eq.s32.totalorder %v78_v45, %v750_v10 }
  0x5e   :  { %vm600_vm13 = vmpackc.low %vm150_vm11, %vm148_vm10 }
  0x60   :  { %591 = vmatpush1.bf16.msk.msra.mxu0 %vm590_vm0, %v685_v15  ;;  %vm602_vm0 = vmpackc.low %vm149_vm15, %vm147_vm14 }
  0x61   :  { %593 = vmatprep.subr.msk.bf16.mxu0 %vm592_vm1, %v685_v15  ;;  %vm382_vm1 = vcmp.eq.s32.totalorder %v812_v28, 1 }
  0x64   :  { %595 = vmatpush1.bf16.msk.msra.mxu0 %vm594_vm6, %v685_v15 }
  0x65   :  { %597 = vmatprep.subr.msk.bf16.mxu0 %vm596_vm7, %v685_v15 }
  0x68   :  { %599 = vmatpush1.bf16.msk.msra.mxu0 %vm598_vm12, %v685_v15 }
  0x69   :  { %601 = vmatprep.subr.msk.bf16.mxu0 %vm600_vm13, %v685_v15 }
  0x6c   :  { %603 = vmatpush1.bf16.msk.msra.mxu0 %vm602_vm0, %v685_v15 }
  0x6f   :  { %346 = vmatmul.mubr.f32.vlgmr.msra.gmra.mrb[0].mxu0 %v279_v46 }
  0xa6   :  { %v388_v47 = vpop.permute.xlu0 %387 }
 0x142   :  { %v347_v48 = vpop.f32.mrb[0].mxu0 }
 0x143   :  { %v349_v49 = vpop.f32.mrb[1].mxu0  ;;  %v392_v50 = vsel %vm382_vm1, %v347_v48, %v388_v47 }
 0x144   :  { %v393_v51 = vsel %vm383_vm2, %v349_v49, %v388_v47  ;;  %394 = vst [vmem:[#allocation7] sm:$0xff] %v392_v50 }
 0x145   :  { %395 = vst [vmem:[#allocation7 + $0x8] sm:$0xff] %v393_v51 }
 0x146   :  { %665 = shalt.err (!%p662_p6)
}
 0x147   :  { %s666_s20 = scalar_lea.hbm %s914_s4, 256 }
 0x148   :  { %p667_p7 = scmp.ne.s32.totalorder %s914_s4, %s666_s20  ;;  %p670_p8 = scmp.lt.u32.totalorder %s666_s20, %s914_s4 }
 0x14a   :  { %p672_p9 = pnand %p670_p8, %p667_p7 }
 0x14c   :  { %675 = shalt.err (!%p672_p9)
}
 0x14d   :  { %405 = dma.vmem_to_hbm [thread:$0]  %s403_s17, 256, %s914_s4, [#allocation4]  }
 0x14e   :  { %680 = dma.done.wait [#allocation4], 256  }
 0x14f   :  { %681 = vsyncadd [#allocation4], 4294967040 }
 0x150   :  { %409 = vsyncpa [#allocation3], 1 }
 0x151   :  { %410 = vsyncpa [#allocation6], 1 }
 0x152   :  { %411 = vsyncpa [#allocation4], 1 }

</bundles_post_ra>
